<compile_context>
chip_gen: v6e
topology: v6e:2x2x1
jax: 0.10.0
libtpu: 0.0.40
codegen_flags: <defaults>
</compile_context>

<pallas_src>
import jax
import jax.numpy as jnp
from jax.experimental import pallas as pl
from jax.experimental.pallas import tpu as pltpu

LANES = 128
TILE_VMEM_BUDGET = 16 * 1024 * 1024   # bytes for the double-buffered x + out tiles
VMEM_LIMIT = 32 * 1024 * 1024         # safe on v5e/v6e/v7x, well above what we use


def _round_up(n, m):
    return ((n + m - 1) // m) * m


def _block_diag(w, p):
    """(d, h) -> (p*d, p*h): p copies of w on the block diagonal."""
    d, h = w.shape
    eye = jnp.eye(p, dtype=w.dtype)
    return jnp.einsum("pq,dh->pdqh", eye, w).reshape(p * d, p * h)


def mlp_kernel(x_ref, w1_ref, b1_ref, w2_ref, b2_ref, o_ref):
    # fc1 (P samples per packed row) on the MXU, f32 accumulation.
    h = jnp.dot(x_ref[...], w1_ref[...], preferred_element_type=jnp.float32)
    # bias + ReLU on the VPU.
    h = jnp.maximum(h + b1_ref[...], 0.0)
    # fc2 via the block-diagonal (P*H, P) weight: one scalar per sample.
    y = jnp.dot(h, w2_ref[...], preferred_element_type=jnp.float32) + b2_ref[...]
    # sigmoid on the EUP; packed (rows, P) store (no lane replication).
    o_ref[...] = jax.nn.sigmoid(y).astype(o_ref.dtype)


def mlp_forward(x, w1, b1, w2, b2, *, max_rows=None):
    """MLPModel forward. x: (B, D) f32 -> (B, 1) f32."""
    B, D = x.shape
    H = w1.shape[1]

    # Lane packing factor: P samples side by side so the x tile's minor dim is
    # (close to) 128 lanes.
    if D <= LANES:
        P = max(1, min(LANES // D, max(1, 512 // max(H, 1))))
    else:
        P = 1

    # Pad the batch only to a multiple of P (tiny; a no-op for aligned batches).
    B_pad = _round_up(B, P)
    if B_pad != B:
        x = jnp.pad(x, ((0, B_pad - B), (0, 0)))
    R = B_pad // P                       # packed rows
    x_packed = x.reshape(R, P * D)       # free, contiguous reshape

    # Packed parameters (small; built once).
    w1_blk = _block_diag(w1, P)                          # (P*D, P*H)
    b1_row = jnp.tile(jnp.reshape(b1, (1, H)), (1, P))   # (1, P*H)
    w2_blk = _block_diag(jnp.reshape(w2, (H, 1)), P)     # (P*H, P)
    b2_sc = jnp.reshape(b2, (1, 1))                      # (1, 1)

    # Row-tile: as large as the VMEM budget allows (>= ~1 MiB of x per step to
    # amortize per-grid-step overhead), but keep >= 2 grid steps when possible
    # so v7x's two TensorCores both get work.
    bytes_per_row = (max(P * D, LANES) + LANES) * 4 * 2   # dbl-buffered x + out
    tbr_cap = max(8, (TILE_VMEM_BUDGET // bytes_per_row) // 8 * 8)
    if max_rows is not None:
        tbr_cap = min(tbr_cap, max(8, (max_rows // 8) * 8))
    if R <= 8:
        TBr = R                                       # single full-array block
    else:
        TBr = max(8, min(tbr_cap, _round_up(pl.cdiv(R, 2), 8)))
    grid = (pl.cdiv(R, TBr),)                         # ragged last block is masked

    cost = pl.CostEstimate(
        flops=2 * R * (P * D) * (P * H) + 2 * R * (P * H) * P,
        transcendentals=R * P,
        bytes_accessed=4 * (R * P * D           # x read
                            + R * P             # packed output write
                            + P * D * P * H     # w1 block
                            + P * H             # b1
                            + P * H * P         # w2 block
                            + 1),               # b2
    )

    out = pl.pallas_call(
        mlp_kernel,
        out_shape=jax.ShapeDtypeStruct((R, P), jnp.float32),
        grid_spec=pl.GridSpec(
            grid=grid,
            in_specs=[
                pl.BlockSpec((TBr, P * D), lambda i: (i, 0)),    # x: tiled rows
                pl.BlockSpec((P * D, P * H), lambda i: (0, 0)),  # w1 (resident)
                pl.BlockSpec((1, P * H), lambda i: (0, 0)),      # b1 (resident)
                pl.BlockSpec((P * H, P), lambda i: (0, 0)),      # w2 (resident)
                pl.BlockSpec((1, 1), lambda i: (0, 0)),          # b2 (resident)
            ],
            out_specs=pl.BlockSpec((TBr, P), lambda i: (i, 0)),  # packed output
        ),
        compiler_params=pltpu.CompilerParams(
            dimension_semantics=("parallel",),
            vmem_limit_bytes=VMEM_LIMIT,
        ),
        cost_estimate=cost,
    )(x_packed, w1_blk, b1_row, w2_blk, b2_sc)

    # (R, P) -> (B_pad, 1) is a free contiguous reshape; drop the padded rows.
    return out.reshape(B_pad, 1)[:B]


def init_params(key, input_dim, hidden_dim=32):
    # Mimics PyTorch nn.Linear default init: U(-1/sqrt(fan_in), 1/sqrt(fan_in)).
    k1, k2, k3, k4 = jax.random.split(key, 4)
    bound1 = 1.0 / jnp.sqrt(jnp.float32(input_dim))
    bound2 = 1.0 / jnp.sqrt(jnp.float32(hidden_dim))
    w1 = jax.random.uniform(k1, (input_dim, hidden_dim), jnp.float32, -bound1, bound1)
    b1 = jax.random.uniform(k2, (hidden_dim,), jnp.float32, -bound1, bound1)
    w2 = jax.random.uniform(k3, (hidden_dim, 1), jnp.float32, -bound2, bound2)
    b2 = jax.random.uniform(k4, (1,), jnp.float32, -bound2, bound2)
    return w1, b1, w2, b2


def reference_forward(x, w1, b1, w2, b2):
    h = jnp.maximum(x @ w1 + b1, 0.0)
    return jax.nn.sigmoid(h @ w2 + b2)


if __name__ == "__main__":
    key = jax.random.PRNGKey(0)
    k_x, k_p, k_x2 = jax.random.split(key, 3)

    batch, input_dim, hidden_dim = 64, 16, 32
    x = jax.random.normal(k_x, (batch, input_dim), jnp.float32)
    w1, b1, w2, b2 = init_params(k_p, input_dim, hidden_dim)

    # Small run (single packed tile).
    out = jax.block_until_ready(mlp_forward(x, w1, b1, w2, b2))
    ref = reference_forward(x, w1, b1, w2, b2)
    assert out.shape == (batch, 1)
    assert jnp.allclose(out, ref, atol=1e-5, rtol=1e-5)

    # Larger run exercising the multi-step grid and the ragged last block.
    big_batch = 520
    x_big = jax.random.normal(k_x2, (big_batch, input_dim), jnp.float32)
    out_big = jax.block_until_ready(mlp_forward(x_big, w1, b1, w2, b2))
    ref_big = reference_forward(x_big, w1, b1, w2, b2)
    assert out_big.shape == (big_batch, 1)
    assert jnp.allclose(out_big, ref_big, atol=1e-5, rtol=1e-5)

    print("KERNEL_OK")
</pallas_src>

<mosaic_0001>
module attributes {stable_mosaic.version = 11 : i64} {
  func.func @mlp_kernel(%arg0: i32, %arg1: memref<8x128xf32, #tpu.memory_space<vmem>>, %arg2: memref<128x256xf32, #tpu.memory_space<vmem>>, %arg3: memref<1x256xf32, #tpu.memory_space<vmem>>, %arg4: memref<256x8xf32, #tpu.memory_space<vmem>>, %arg5: memref<1x1xf32, #tpu.memory_space<vmem>>, %arg6: memref<8x8xf32, #tpu.memory_space<vmem>>) attributes {dimension_semantics = [#tpu.dimension_semantics<parallel>], iteration_bounds = array<i64: 1>, scalar_prefetch = 0 : i64, scratch_operands = 0 : i64, tpu.core_type = #tpu.core_type<tc>, window_params = [{transform_indices = @transform_0, window_bounds = array<i64: 8, 128>}, {pipeline_mode = #tpu.pipeline_mode<synchronous>, transform_indices = @transform_1, window_bounds = array<i64: 128, 256>}, {pipeline_mode = #tpu.pipeline_mode<synchronous>, transform_indices = @transform_2, window_bounds = array<i64: 1, 256>}, {pipeline_mode = #tpu.pipeline_mode<synchronous>, transform_indices = @transform_3, window_bounds = array<i64: 256, 8>}, {pipeline_mode = #tpu.pipeline_mode<synchronous>, transform_indices = @transform_4, window_bounds = array<i64: 1, 1>}, {transform_indices = @transform_5, window_bounds = array<i64: 8, 8>}]} {
    %c0 = arith.constant 0 : index
    %c0_0 = arith.constant 0 : index
    %0 = vector.load %arg1[%c0, %c0_0] : memref<8x128xf32, #tpu.memory_space<vmem>>, vector<8x128xf32>
    %c0_1 = arith.constant 0 : index
    %c0_2 = arith.constant 0 : index
    %1 = vector.load %arg2[%c0_1, %c0_2] : memref<128x256xf32, #tpu.memory_space<vmem>>, vector<128x256xf32>
    %cst = arith.constant dense<0.000000e+00> : vector<8x256xf32>
    %2 = tpu.matmul %0, %1, %cst {dimension_numbers = #tpu.dot_dimension_numbers<[1], [0], [0], [1], [0, 0, 1, 1], [], []>} : vector<8x128xf32>, vector<128x256xf32>, vector<8x256xf32> -> vector<8x256xf32>
    %c0_3 = arith.constant 0 : index
    %c0_4 = arith.constant 0 : index
    %3 = vector.load %arg3[%c0_3, %c0_4] : memref<1x256xf32, #tpu.memory_space<vmem>>, vector<1x256xf32>
    %4 = vector.broadcast %3 : vector<1x256xf32> to vector<8x256xf32>
    %5 = arith.addf %2, %4 : vector<8x256xf32>
    %cst_5 = arith.constant 0.000000e+00 : f32
    %6 = vector.broadcast %cst_5 : f32 to vector<8x256xf32>
    %7 = arith.maximumf %5, %6 : vector<8x256xf32>
    %c0_6 = arith.constant 0 : index
    %c0_7 = arith.constant 0 : index
    %8 = vector.load %arg4[%c0_6, %c0_7] : memref<256x8xf32, #tpu.memory_space<vmem>>, vector<256x8xf32>
    %cst_8 = arith.constant dense<0.000000e+00> : vector<8x8xf32>
    %9 = tpu.matmul %7, %8, %cst_8 {dimension_numbers = #tpu.dot_dimension_numbers<[1], [0], [0], [1], [0, 0, 1, 1], [], []>} : vector<8x256xf32>, vector<256x8xf32>, vector<8x8xf32> -> vector<8x8xf32>
    %c0_9 = arith.constant 0 : index
    %c0_10 = arith.constant 0 : index
    %10 = vector.load %arg5[%c0_9, %c0_10] : memref<1x1xf32, #tpu.memory_space<vmem>>, vector<1x1xf32>
    %11 = vector.broadcast %10 : vector<1x1xf32> to vector<8x8xf32>
    %12 = arith.addf %9, %11 : vector<8x8xf32>
    %13 = arith.negf %12 : vector<8x8xf32>
    %14 = math.exp %13 : vector<8x8xf32>
    %cst_11 = arith.constant 1.000000e+00 : f32
    %15 = vector.broadcast %cst_11 : f32 to vector<8x8xf32>
    %16 = arith.addf %15, %14 : vector<8x8xf32>
    %17 = arith.divf %15, %16 : vector<8x8xf32>
    %c0_12 = arith.constant 0 : index
    %c0_13 = arith.constant 0 : index
    %18 = vector.load %arg6[%c0_12, %c0_13] : memref<8x8xf32, #tpu.memory_space<vmem>>, vector<8x8xf32>
    tpu.vector_store %arg6[%c0_12, %c0_13], %17 {strides = array<i32>} : memref<8x8xf32, #tpu.memory_space<vmem>>, vector<8x8xf32>,
    return
  }
  func.func @transform_0(%arg0: i32) -> (i32, i32) {
    %c0_i32 = arith.constant 0 : i32
    %c0_i32_0 = arith.constant 0 : i32
    return %arg0, %c0_i32 : i32, i32
  }
  func.func @transform_1(%arg0: i32) -> (i32, i32) {
    %c0_i32 = arith.constant 0 : i32
    %c0_i32_0 = arith.constant 0 : i32
    %c0_i32_1 = arith.constant 0 : i32
    return %c0_i32, %c0_i32_0 : i32, i32
  }
  func.func @transform_2(%arg0: i32) -> (i32, i32) {
    %c0_i32 = arith.constant 0 : i32
    %c0_i32_0 = arith.constant 0 : i32
    %c0_i32_1 = arith.constant 0 : i32
    return %c0_i32, %c0_i32_0 : i32, i32
  }
  func.func @transform_3(%arg0: i32) -> (i32, i32) {
    %c0_i32 = arith.constant 0 : i32
    %c0_i32_0 = arith.constant 0 : i32
    %c0_i32_1 = arith.constant 0 : i32
    return %c0_i32, %c0_i32_0 : i32, i32
  }
  func.func @transform_4(%arg0: i32) -> (i32, i32) {
    %c0_i32 = arith.constant 0 : i32
    %c0_i32_0 = arith.constant 0 : i32
    %c0_i32_1 = arith.constant 0 : i32
    return %c0_i32, %c0_i32_0 : i32, i32
  }
  func.func @transform_5(%arg0: i32) -> (i32, i32) {
    %c0_i32 = arith.constant 0 : i32
    %c0_i32_0 = arith.constant 0 : i32
    return %arg0, %c0_i32 : i32, i32
  }
}

</mosaic_0001>

<bundles_post_ra>
// kernel: tpu_custom_call.1
= control target key start
LH: loop header
LB: loop body
LE: loop exit
PB: predicated region body
PF: predicated region fallthrough
CT: control target
= control target key end

     0   :  { %s579_s0 = inlined_call_operand.vmem [shape: f32[8,128], index: 0, kind: input, shape index: {}]   ;;  %s580_s1 = inlined_call_operand.vmem [shape: f32[128,256], index: 1, kind: input, shape index: {}]   ;;  %s581_s2 = inlined_call_operand.vmem [shape: f32[1,256], index: 2, kind: input, shape index: {}]   ;;  %s582_s3 = inlined_call_operand.vmem [shape: f32[256,8], index: 3, kind: input, shape index: {}]   ;;  %s583_s4 = inlined_call_operand.<no memory space> [shape: f32[1,1], index: 4, kind: input, shape index: {}]   ;;  %s584_s5 = inlined_call_operand.hbm [shape: f32[8,8], index: 5, kind: output, shape index: {}]  }
   0x1   :  { %v10_v0 = vstv %s583_s4 }
   0x2   :  { %11 = vst [vmem:[#allocation2] sm:$0x1] %v10_v0 }
   0x3   :  { %v55_v1 = vld [vmem:[%s580_s1 + $0xf8] sm:$0xff]  ;;  %v54_v2 = vld [vmem:[%s580_s1 + $0xf0] sm:$0xff]  ;;  %v53_v3 = vld [vmem:[%s580_s1 + $0xe8] sm:$0xff]  ;;  %v342_v5 = vmov 0.0  }
   0x4   :  { %68 = vmatprep.subr.mxu0 %v55_v1  ;;  %v52_v4 = vld [vmem:[%s580_s1 + $0xe0] sm:$0xff]  ;;  %132 = vmatprep.mubr.f32.mxu0 %v342_v5  ;;  %v51_v6 = vld [vmem:[%s580_s1 + $0xd8] sm:$0xff]  ;;  %v50_v7 = vld [vmem:[%s580_s1 + $0xd0] sm:$0xff] }
   0x5   :  { %69 = vmatpush1.msra.mxu0 %v54_v2  ;;  %v49_v8 = vld [vmem:[%s580_s1 + $0xc8] sm:$0xff]  ;;  %v48_v9 = vld [vmem:[%s580_s1 + $0xc0] sm:$0xff]  ;;  %v47_v10 = vld [vmem:[%s580_s1 + $0xb8] sm:$0xff] }
   0x6   :  { %70 = vmatprep.subr.mxu0 %v53_v3  ;;  %v46_v11 = vld [vmem:[%s580_s1 + $0xb0] sm:$0xff]  ;;  %v45_v12 = vld [vmem:[%s580_s1 + $0xa8] sm:$0xff]  ;;  %v44_v13 = vld [vmem:[%s580_s1 + $0xa0] sm:$0xff] }
   0x7   :  { %71 = vmatpush1.msra.mxu0 %v52_v4  ;;  %v43_v14 = vld [vmem:[%s580_s1 + $0x98] sm:$0xff]  ;;  %v42_v15 = vld [vmem:[%s580_s1 + $0x90] sm:$0xff]  ;;  %v41_v19 = vld [vmem:[%s580_s1 + $0x88] sm:$0xff] }
   0x8   :  { %72 = vmatprep.subr.mxu0 %v51_v6  ;;  %v172_v16 = vld [vmem:[%s582_s3 + $0xf8] sm:$0xff]  ;;  %v171_v18 = vld [vmem:[%s582_s3 + $0xf0] sm:$0xff]  ;;  %v40_v21 = vld [vmem:[%s580_s1 + $0x80] sm:$0xff] }
   0x9   :  { %73 = vmatpush1.msra.mxu0 %v50_v7  ;;  %v156_v17 = vld [vmem:[%s582_s3 + $0x78] sm:$0xff]  ;;  %277 = vmatprep.subr.mxu1 %v172_v16  ;;  %v155_v20 = vld [vmem:[%s582_s3 + $0x70] sm:$0xff]  ;;  %v170_v22 = vld [vmem:[%s582_s3 + $0xe8] sm:$0xff] }
   0xa   :  { %74 = vmatprep.subr.mxu0 %v49_v8  ;;  %278 = vmatpush3.msra.mxu1 %v156_v17  ;;  %v39_v23 = vld [vmem:[%s580_s1 + $0x78] sm:$0xff]  ;;  %v154_v24 = vld [vmem:[%s582_s3 + $0x68] sm:$0xff]  ;;  %v38_v25 = vld [vmem:[%s580_s1 + $0x70] sm:$0xff] }
   0xb   :  { %75 = vmatpush1.msra.mxu0 %v48_v9  ;;  %279 = vmatprep.subr.mxu1 %v171_v18  ;;  %v169_v26 = vld [vmem:[%s582_s3 + $0xe0] sm:$0xff]  ;;  %v37_v27 = vld [vmem:[%s580_s1 + $0x68] sm:$0xff]  ;;  %v168_v30 = vld [vmem:[%s582_s3 + $0xd8] sm:$0xff] }
   0xc   :  { %76 = vmatprep.subr.mxu0 %v47_v10  ;;  %280 = vmatpush3.msra.mxu1 %v155_v20  ;;  %v153_v28 = vld [vmem:[%s582_s3 + $0x60] sm:$0xff]  ;;  %v35_v31 = vld [vmem:[%s580_s1 + $0x58] sm:$0xff]  ;;  %v34_v33 = vld [vmem:[%s580_s1 + $0x50] sm:$0xff] }
   0xd   :  { %77 = vmatpush1.msra.mxu0 %v46_v11  ;;  %281 = vmatprep.subr.mxu1 %v170_v22  ;;  %v36_v29 = vld [vmem:[%s580_s1 + $0x60] sm:$0xff]  ;;  %v152_v32 = vld [vmem:[%s582_s3 + $0x58] sm:$0xff]  ;;  %v167_v34 = vld [vmem:[%s582_s3 + $0xd0] sm:$0xff] }
   0xe   :  { %78 = vmatprep.subr.mxu0 %v45_v12  ;;  %282 = vmatpush3.msra.mxu1 %v154_v24 }
   0xf   :  { %79 = vmatpush1.msra.mxu0 %v44_v13  ;;  %283 = vmatprep.subr.mxu1 %v169_v26 }
  0x10   :  { %80 = vmatprep.subr.mxu0 %v43_v14  ;;  %284 = vmatpush3.msra.mxu1 %v153_v28 }
  0x11   :  { %81 = vmatpush1.msra.mxu0 %v42_v15 }
  0x12   :  { %82 = vmatprep.subr.mxu0 %v41_v19 }
  0x13   :  { %83 = vmatpush1.msra.mxu0 %v40_v21 }
  0x14   :  { %84 = vmatprep.subr.mxu0 %v39_v23 }
  0x15   :  { %85 = vmatpush1.msra.mxu0 %v38_v25 }
  0x16   :  { %86 = vmatprep.subr.mxu0 %v37_v27 }
  0x17   :  { %12 = vsyncpa [#allocation4], 0  ;;  %87 = vmatpush1.msra.mxu0 %v36_v29  ;;  %v33_v35 = vld [vmem:[%s580_s1 + $0x48] sm:$0xff]  ;;  %285 = vmatprep.subr.mxu1 %v168_v30  ;;  %v151_v36 = vld [vmem:[%s582_s3 + $0x50] sm:$0xff]  ;;  %v343_v4 = vmov 0   ;;  %v58_v5 = vlaneseq  ;;  %vm259_vm0 = vcmask 64512  }
  0x18   :  { %88 = vmatprep.subr.mxu0 %v35_v31  ;;  %v32_v37 = vld [vmem:[%s580_s1 + $0x40] sm:$0xff]  ;;  %286 = vmatpush3.msra.mxu1 %v152_v32  ;;  %v166_v38 = vld [vmem:[%s582_s3 + $0xc8] sm:$0xff]  ;;  %v31_v39 = vld [vmem:[%s580_s1 + $0x38] sm:$0xff] }
  0x19   :  { %89 = vmatpush1.msra.mxu0 %v34_v33  ;;  %287 = vmatprep.subr.mxu1 %v167_v34  ;;  %v150_v40 = vld [vmem:[%s582_s3 + $0x48] sm:$0xff]  ;;  %v30_v41 = vld [vmem:[%s580_s1 + $0x30] sm:$0xff]  ;;  %v165_v42 = vld [vmem:[%s582_s3 + $0xc0] sm:$0xff]  ;;  %v59_v6 = vshrl.u32 %v58_v5, 7 }
  0x1a   :  { %90 = vmatprep.subr.mxu0 %v33_v35  ;;  %288 = vmatpush3.msra.mxu1 %v151_v36  ;;  %v29_v43 = vld [vmem:[%s580_s1 + $0x28] sm:$0xff]  ;;  %v149_v44 = vld [vmem:[%s582_s3 + $0x40] sm:$0xff]  ;;  %v164_v46 = vld [vmem:[%s582_s3 + $0xb8] sm:$0xff] }
  0x1b   :  { %91 = vmatpush1.msra.mxu0 %v32_v37  ;;  %289 = vmatprep.subr.mxu1 %v166_v38  ;;  %v28_v45 = vld [vmem:[%s580_s1 + $0x20] sm:$0xff]  ;;  %v27_v47 = vld [vmem:[%s580_s1 + $0x18] sm:$0xff]  ;;  %v26_v49 = vld [vmem:[%s580_s1 + $0x10] sm:$0xff]  ;;  %v60_v7 = vsub.s32 0, %v59_v6  ;;  %v64_v9 = vsub.s32 1, %v59_v6 }
  0x1c   :  { %92 = vmatprep.subr.mxu0 %v31_v39  ;;  %290 = vmatpush3.msra.mxu1 %v150_v40  ;;  %v148_v48 = vld [vmem:[%s582_s3 + $0x38] sm:$0xff]  ;;  %v163_v50 = vld [vmem:[%s582_s3 + $0xb0] sm:$0xff]  ;;  %v25_v51 = vld [vmem:[%s580_s1 + $0x8] sm:$0xff] }
  0x1d   :  { %93 = vmatpush1.msra.mxu0 %v30_v41  ;;  %291 = vmatprep.subr.mxu1 %v165_v42  ;;  %v147_v52 = vld [vmem:[%s582_s3 + $0x30] sm:$0xff]  ;;  %v24_v53 = vld [vmem:[%s580_s1] sm:$0xff]  ;;  %v162_v54 = vld [vmem:[%s582_s3 + $0xa8] sm:$0xff] }
  0x1e   :  { %94 = vmatprep.subr.mxu0 %v29_v43  ;;  %292 = vmatpush3.msra.mxu1 %v149_v44  ;;  %v23_v55 = vld [vmem:[%s579_s0] sm:$0xff]  ;;  %v146_v56 = vld [vmem:[%s582_s3 + $0x28] sm:$0xff]  ;;  %v160_v59 = vld [vmem:[%s582_s3 + $0x98] sm:$0xff] }
  0x1f   :  { %95 = vmatpush1.msra.mxu0 %v28_v45  ;;  %293 = vmatprep.subr.mxu1 %v164_v46  ;;  %v161_v57 = vld [vmem:[%s582_s3 + $0xa0] sm:$0xff]  ;;  %v144_v60 = vld [vmem:[%s582_s3 + $0x18] sm:$0xff]  ;;  %v159_v61 = vld [vmem:[%s582_s3 + $0x90] sm:$0xff] }
  0x20   :  { %96 = vmatprep.subr.mxu0 %v27_v47  ;;  %294 = vmatpush3.msra.mxu1 %v148_v48  ;;  %v145_v58 = vld [vmem:[%s582_s3 + $0x20] sm:$0xff]  ;;  %v143_v62 = vld [vmem:[%s582_s3 + $0x10] sm:$0xff]  ;;  %v158_v63 = vld [vmem:[%s582_s3 + $0x88] sm:$0xff] }
  0x21   :  { %97 = vmatpush1.msra.mxu0 %v26_v49  ;;  %295 = vmatprep.subr.mxu1 %v163_v50  ;;  %v142_v0 = vld [vmem:[%s582_s3 + $0x8] sm:$0xff]  ;;  %v157_v1 = vld [vmem:[%s582_s3 + $0x80] sm:$0xff] }
  0x22   :  { %98 = vmatprep.subr.mxu0 %v25_v51  ;;  %296 = vmatpush3.msra.mxu1 %v147_v52  ;;  %v141_v2 = vld [vmem:[%s582_s3] sm:$0xff] }
  0x23   :  { %99 = vmatpush1.msra.mxu0 %v24_v53  ;;  %297 = vmatprep.subr.mxu1 %v162_v54  ;;  %v275_v3 = vld [vmem:[#allocation2] ss:$0 sm:$0xff] }
  0x24   :  { %133 = vmatmul.mubr.f32.vlgmr.msra.gmra.mxu0 %v23_v55  ;;  %298 = vmatpush3.msra.mxu1 %v146_v56  ;;  %v56_v8 = vld [vmem:[%s581_s2] sm:$0x3]  ;;  %s344_s2 = smov [#allocation3]  }
  0x25   :  { %299 = vmatprep.subr.mxu1 %v161_v57  ;;  %315 = vset.pattern.permute.xlu0 %v343_v4  ;;  %v61_v10 = vrot.slane %v56_v8, %v60_v7  ;;  %v65_v11 = vrot.slane %v56_v8, %v64_v9  ;;  %s267_s3 = sshll.u32 %s344_s2, 4  ;;  %s268_s3 = int_to_ptr.vmem [resolvable:$true] %s267_s3 }
  0x26   :  { %300 = vmatpush3.msra.mxu1 %v145_v58  ;;  %180 = vperm.xlu0 %315, %v275_v3   ;;  %s320_s20 = scalar_lea.vmem %s268_s3, 128  ;;  %p325_p1 = scmp.lt.s32.totalorder %s268_s3, %s268_s3 }
  0x27   :  { %301 = vmatprep.subr.mxu1 %v160_v59  ;;  %p321_p0 = scmp.ne.s32.totalorder %s268_s3, %s320_s20  ;;  %p326_p2 = scmp.lt.s32.totalorder %s320_s20, %s320_s20 }
  0x28   :  { %302 = vmatpush3.msra.mxu1 %v144_v60 }
  0x29   :  { %303 = vmatprep.subr.mxu1 %v159_v61  ;;  %p327_p3 = por %p326_p2, %p325_p1 }
  0x2a   :  { %304 = vmatpush3.msra.mxu1 %v143_v62 }
  0x2b   :  { %305 = vmatprep.subr.mxu1 %v158_v63  ;;  %p328_p4 = pnand %p327_p3, %p321_p0 }
  0x2c   :  { %306 = vmatpush3.msra.mxu1 %v142_v0 }
  0x2d   :  { %307 = vmatprep.subr.mxu1 %v157_v1 }
  0x2e   :  { %308 = vmatpush3.msra.mxu1 %v141_v2 }
  0xa1   :  { %v181_v20 = vpop.permute.xlu0 %180 }
  0xe4   :  { %v134_v12 = vpop.f32.mrf.mxu0 }
  0xe5   :  { %v135_v13 = vadd.f32 %v134_v12, %v61_v10 }
  0xe6   :  { %v136_v14 = vpop.f32.mrf.mxu0 }
  0xe7   :  { %v137_v15 = vadd.f32 %v136_v14, %v65_v11  ;;  %v139_v17 = vmax.f32 %v135_v13, 0.0 }
  0xe9   :  { %v140_v16 = vmax.f32 %v137_v15, 0.0 }
  0xeb   :  { %247 = vmatprep.mubr.f32.mxu1 %v140_v16 }
  0xec   :  { %248 = vmatmul.mubr.f32.vlgmr.msra.gmra.mxu1 %v139_v17 }
 0x1ac   :  { %v309_v18 = vpop.f32.mrf.mxu1 }
 0x1ae   :  { %v310_v19 = vpop.f32.mrf.mxu1 }
 0x1af   :  { %v311_v21 = vadd.f32 %v310_v19, %v309_v18 }
 0x1b1   :  { %v250_v22 = vadd.f32 %v311_v21, %v181_v20 }
 0x1b3   :  { %v276_v23 = vmul.f32 -1.442695, %v250_v22 }
 0x1b5   :  { %316 = vpow2.f32 %v276_v23 }
 0x1c2   :  { %v317_v24 = vpop.eup %316 }
 0x1c3   :  { %v256_v25 = vadd.f32 1.0, %v317_v24 }
 0x1c5   :  { %318 = vrcp.f32 %v256_v25 }
 0x1d2   :  { %v319_v26 = vpop.eup %318 }
 0x1d3   :  { %260 = vst.msk [vmem:[#allocation3] sm:$0xff] %vm259_vm0, %v319_v26 }
 0x1d4   :  { %331 = shalt.err (!%p328_p4)
}
 0x1d5   :  { %270 = dma.vmem_to_hbm [thread:$0]  %s268_s3, 128, %s584_s5, [#allocation4]  }
 0x1d6   :  { %340 = dma.done.wait [#allocation4], 128  }
 0x1d7   :  { %341 = vsyncadd [#allocation4], 4294967168 }
 0x1d8   :  { %274 = vsyncpa [#allocation4], 1 }

</bundles_post_ra>
